<compile_context>
chip_gen: v7x
topology: tpu7x:2x2x1
jax: 0.10.0
libtpu: 0.0.40
codegen_flags: <defaults>
</compile_context>

<pallas_src>
from functools import partial

import jax
import jax.numpy as jnp
from jax.experimental import pallas as pl
from jax.experimental.pallas import tpu as pltpu


def round_up(x: int, m: int) -> int:
    return ((x + m - 1) // m) * m


# ---------------------------------------------------------------------------
# Pallas kernel: fused L-layer MLP on padded, packed parameters.
#   x_ref : (TM, P)    bf16   batch tile (streamed)
#   w_ref : (L, P, P)  bf16   packed, pre-transposed (in, out) weights (resident)
#   b_ref : (L, 1, P)  f32    packed biases (resident)
#   o_ref : (TM, P)    f32    lane-dense output tile (streamed)
# ---------------------------------------------------------------------------
def capacity_mlp_kernel(x_ref, w_ref, b_ref, o_ref, *, n_layers):
    h = x_ref[...]                                   # bf16 (TM, P)
    for l in range(n_layers):                        # static unrolled loop
        acc = jnp.dot(h, w_ref[l],                   # MXU, f32 accumulate
                      preferred_element_type=jnp.float32)
        acc = acc + b_ref[l]                         # (1, P) broadcast, f32
        if l < n_layers - 1:
            acc = jnp.maximum(acc, 0.0)              # ReLU between layers
            h = acc.astype(jnp.bfloat16)             # back to bf16 for MXU
        else:
            # activation_out=None in the reference module -> plain store
            o_ref[...] = acc.astype(o_ref.dtype)


# ---------------------------------------------------------------------------
# One-time parameter preparation (outside the hot path):
#   - transpose each (out, in) torch-layout weight to (in, out)
#   - zero-pad every feature dim to a common lane-dense width P (>=128)
#   - pack weights -> (L, P, P) bf16, biases -> (L, 1, P) f32
# Zero padding keeps the math exact: padded input columns are zero and padded
# weight rows/cols are zero, so they contribute nothing.
# ---------------------------------------------------------------------------
def prepare_params(params):
    dims = [params[0][0].shape[1]] + [w.shape[0] for (w, _) in params]
    P = round_up(max(dims + [128]), 128)
    ws, bs = [], []
    for (w, b) in params:
        out_d, in_d = w.shape
        wt = jnp.zeros((P, P), jnp.float32).at[:in_d, :out_d].set(w.T)
        bb = jnp.zeros((1, P), jnp.float32).at[0, :out_d].set(b)
        ws.append(wt)
        bs.append(bb)
    W = jnp.stack(ws).astype(jnp.bfloat16)   # (L, P, P) bf16
    B = jnp.stack(bs)                        # (L, 1, P) f32
    return W, B, P


@partial(jax.jit, static_argnames=("size_in", "size_out", "tm"))
def capacity_model_forward(x, W, B, *, size_in, size_out, tm=128):
    """x: (batch, size_in) f32;  W/B from prepare_params."""
    batch = x.shape[0]
    L, P, _ = W.shape

    padded_batch = round_up(max(batch, tm), tm)
    xp = jnp.zeros((padded_batch, P), jnp.bfloat16)
    xp = xp.at[:batch, :size_in].set(x.astype(jnp.bfloat16))

    grid = (padded_batch // tm,)
    out_padded = pl.pallas_call(
        partial(capacity_mlp_kernel, n_layers=L),
        out_shape=jax.ShapeDtypeStruct((padded_batch, P), jnp.float32),
        grid_spec=pltpu.PrefetchScalarGridSpec(
            num_scalar_prefetch=0,
            grid=grid,
            in_specs=[
                pl.BlockSpec((tm, P), lambda i: (i, 0)),       # x tile streams
                pl.BlockSpec((L, P, P), lambda i: (0, 0, 0)),  # weights resident
                pl.BlockSpec((L, 1, P), lambda i: (0, 0, 0)),  # biases resident
            ],
            out_specs=pl.BlockSpec((tm, P), lambda i: (i, 0)),
        ),
        compiler_params=pltpu.CompilerParams(
            dimension_semantics=("parallel",),                 # v7x: 2 TCs
        ),
    )(xp, W, B)
    return out_padded[:batch, :size_out]


# ---------------------------------------------------------------------------
# Deterministic parameter init (PyTorch nn.Linear default: U(-1/sqrt(in), ..))
# ---------------------------------------------------------------------------
def init_linear(key, size_in, size_out):
    kw, kb = jax.random.split(key)
    bound = 1.0 / (size_in ** 0.5)
    w = jax.random.uniform(kw, (size_out, size_in), jnp.float32, -bound, bound)
    b = jax.random.uniform(kb, (size_out,), jnp.float32, -bound, bound)
    return w, b


def reference_forward_f32(x, params):
    """Pure-f32 JAX reference of CapacityModel.forward (fresh state)."""
    h = x
    for i, (w, b) in enumerate(params):
        h = h @ w.T + b
        if i < len(params) - 1:
            h = jnp.maximum(h, 0.0)
    return h


def reference_forward_bf16(x, params):
    """Reference with the same bf16-input / f32-accumulate numerics as the kernel."""
    h = x.astype(jnp.bfloat16)
    for i, (w, b) in enumerate(params):
        h = jnp.dot(h, w.T.astype(jnp.bfloat16),
                    preferred_element_type=jnp.float32) + b
        if i < len(params) - 1:
            h = jnp.maximum(h, 0.0).astype(jnp.bfloat16)
    return h


if __name__ == "__main__":
    # CapacityModel(size_in=32, size_out=16, layers=[32, 32],
    #               activation_name='relu', activation_out=None, ...)
    size_in, hidden0, hidden1, size_out = 32, 32, 32, 16
    batch = 8

    key = jax.random.PRNGKey(0)
    kx, k0, k1, k2 = jax.random.split(key, 4)

    x = jax.random.normal(kx, (batch, size_in), jnp.float32)
    params = (
        init_linear(k0, size_in, hidden0),
        init_linear(k1, hidden0, hidden1),
        init_linear(k2, hidden1, size_out),
    )

    # one-time prep (transpose / pad / pack) — not in the hot path
    W, B, _ = prepare_params(params)

    out = capacity_model_forward(x, W, B,
                                 size_in=size_in, size_out=size_out, tm=128)
    out = jax.block_until_ready(out)

    assert out.shape == (batch, size_out)
    # tight check vs. a reference with identical bf16/f32-acc numerics
    ref_bf16 = reference_forward_bf16(x, params)
    assert jnp.allclose(out, ref_bf16, atol=2e-3, rtol=2e-3)
    # loose sanity check vs. the pure-f32 module semantics
    ref_f32 = reference_forward_f32(x, params)
    assert jnp.allclose(out, ref_f32, atol=5e-2, rtol=5e-2)

    # TODO(synk): dynamic bud growth / lipschitz-window bookkeeping is
    # training-time Python control flow (ModuleDict mutation, deques) with no
    # effect on the fresh-state forward pass; not representable in a kernel.
    print("KERNEL_OK")
</pallas_src>

<mosaic_0001>
module attributes {stable_mosaic.version = 11 : i64} {
  func.func @capacity_mlp_kernel(%arg0: i32, %arg1: memref<128x128xbf16, #tpu.memory_space<vmem>>, %arg2: memref<3x128x128xbf16, #tpu.memory_space<vmem>>, %arg3: memref<3x1x128xf32, #tpu.memory_space<vmem>>, %arg4: memref<128x128xf32, #tpu.memory_space<vmem>>) attributes {dimension_semantics = [#tpu.dimension_semantics<parallel>], iteration_bounds = array<i64: 1>, scalar_prefetch = 0 : i64, scratch_operands = 0 : i64, tpu.core_type = #tpu.core_type<tc>, window_params = [{transform_indices = @transform_0, window_bounds = array<i64: 128, 128>}, {pipeline_mode = #tpu.pipeline_mode<synchronous>, transform_indices = @transform_1, window_bounds = array<i64: 3, 128, 128>}, {pipeline_mode = #tpu.pipeline_mode<synchronous>, transform_indices = @transform_2, window_bounds = array<i64: 3, 1, 128>}, {transform_indices = @transform_3, window_bounds = array<i64: 128, 128>}]} {
    %c0 = arith.constant 0 : index
    %c0_0 = arith.constant 0 : index
    %0 = vector.load %arg1[%c0, %c0_0] : memref<128x128xbf16, #tpu.memory_space<vmem>>, vector<128x128xbf16>
    %c0_1 = arith.constant 0 : index
    %c0_2 = arith.constant 0 : index
    %c0_3 = arith.constant 0 : index
    %1 = vector.load %arg2[%c0_1, %c0_2, %c0_3] : memref<3x128x128xbf16, #tpu.memory_space<vmem>>, vector<1x128x128xbf16>
    %2 = vector.shape_cast %1 : vector<1x128x128xbf16> to vector<128x128xbf16>
    %cst = arith.constant dense<0.000000e+00> : vector<128x128xf32>
    %3 = tpu.matmul %0, %2, %cst {dimension_numbers = #tpu.dot_dimension_numbers<[1], [0], [0], [1], [0, 0, 1, 1], [], []>} : vector<128x128xbf16>, vector<128x128xbf16>, vector<128x128xf32> -> vector<128x128xf32>
    %c0_4 = arith.constant 0 : index
    %c0_5 = arith.constant 0 : index
    %c0_6 = arith.constant 0 : index
    %4 = vector.load %arg3[%c0_4, %c0_5, %c0_6] : memref<3x1x128xf32, #tpu.memory_space<vmem>>, vector<1x1x128xf32>
    %5 = vector.shape_cast %4 : vector<1x1x128xf32> to vector<1x128xf32>
    %6 = vector.broadcast %5 : vector<1x128xf32> to vector<128x128xf32>
    %7 = arith.addf %3, %6 : vector<128x128xf32>
    %cst_7 = arith.constant 0.000000e+00 : f32
    %8 = vector.broadcast %cst_7 : f32 to vector<128x128xf32>
    %9 = arith.maximumf %7, %8 : vector<128x128xf32>
    %10 = arith.truncf %9 : vector<128x128xf32> to vector<128x128xbf16>
    %c1 = arith.constant 1 : index
    %c0_8 = arith.constant 0 : index
    %c0_9 = arith.constant 0 : index
    %11 = vector.load %arg2[%c1, %c0_8, %c0_9] : memref<3x128x128xbf16, #tpu.memory_space<vmem>>, vector<1x128x128xbf16>
    %12 = vector.shape_cast %11 : vector<1x128x128xbf16> to vector<128x128xbf16>
    %cst_10 = arith.constant dense<0.000000e+00> : vector<128x128xf32>
    %13 = tpu.matmul %10, %12, %cst_10 {dimension_numbers = #tpu.dot_dimension_numbers<[1], [0], [0], [1], [0, 0, 1, 1], [], []>} : vector<128x128xbf16>, vector<128x128xbf16>, vector<128x128xf32> -> vector<128x128xf32>
    %c1_11 = arith.constant 1 : index
    %c0_12 = arith.constant 0 : index
    %c0_13 = arith.constant 0 : index
    %14 = vector.load %arg3[%c1_11, %c0_12, %c0_13] : memref<3x1x128xf32, #tpu.memory_space<vmem>>, vector<1x1x128xf32>
    %15 = vector.shape_cast %14 : vector<1x1x128xf32> to vector<1x128xf32>
    %16 = vector.broadcast %15 : vector<1x128xf32> to vector<128x128xf32>
    %17 = arith.addf %13, %16 : vector<128x128xf32>
    %cst_14 = arith.constant 0.000000e+00 : f32
    %18 = vector.broadcast %cst_14 : f32 to vector<128x128xf32>
    %19 = arith.maximumf %17, %18 : vector<128x128xf32>
    %20 = arith.truncf %19 : vector<128x128xf32> to vector<128x128xbf16>
    %c2 = arith.constant 2 : index
    %c0_15 = arith.constant 0 : index
    %c0_16 = arith.constant 0 : index
    %21 = vector.load %arg2[%c2, %c0_15, %c0_16] : memref<3x128x128xbf16, #tpu.memory_space<vmem>>, vector<1x128x128xbf16>
    %22 = vector.shape_cast %21 : vector<1x128x128xbf16> to vector<128x128xbf16>
    %cst_17 = arith.constant dense<0.000000e+00> : vector<128x128xf32>
    %23 = tpu.matmul %20, %22, %cst_17 {dimension_numbers = #tpu.dot_dimension_numbers<[1], [0], [0], [1], [0, 0, 1, 1], [], []>} : vector<128x128xbf16>, vector<128x128xbf16>, vector<128x128xf32> -> vector<128x128xf32>
    %c2_18 = arith.constant 2 : index
    %c0_19 = arith.constant 0 : index
    %c0_20 = arith.constant 0 : index
    %24 = vector.load %arg3[%c2_18, %c0_19, %c0_20] : memref<3x1x128xf32, #tpu.memory_space<vmem>>, vector<1x1x128xf32>
    %25 = vector.shape_cast %24 : vector<1x1x128xf32> to vector<1x128xf32>
    %26 = vector.broadcast %25 : vector<1x128xf32> to vector<128x128xf32>
    %27 = arith.addf %23, %26 : vector<128x128xf32>
    %c0_21 = arith.constant 0 : index
    %c0_22 = arith.constant 0 : index
    %28 = vector.load %arg4[%c0_21, %c0_22] : memref<128x128xf32, #tpu.memory_space<vmem>>, vector<128x128xf32>
    tpu.vector_store %arg4[%c0_21, %c0_22], %27 {strides = array<i32>} : memref<128x128xf32, #tpu.memory_space<vmem>>, vector<128x128xf32>,
    return
  }
  func.func @transform_0(%arg0: i32) -> (i32, i32) {
    %c0_i32 = arith.constant 0 : i32
    %c0_i32_0 = arith.constant 0 : i32
    return %arg0, %c0_i32 : i32, i32
  }
  func.func @transform_1(%arg0: i32) -> (i32, i32, i32) {
    %c0_i32 = arith.constant 0 : i32
    %c0_i32_0 = arith.constant 0 : i32
    %c0_i32_1 = arith.constant 0 : i32
    %c0_i32_2 = arith.constant 0 : i32
    return %c0_i32, %c0_i32_0, %c0_i32_1 : i32, i32, i32
  }
  func.func @transform_2(%arg0: i32) -> (i32, i32, i32) {
    %c0_i32 = arith.constant 0 : i32
    %c0_i32_0 = arith.constant 0 : i32
    %c0_i32_1 = arith.constant 0 : i32
    %c0_i32_2 = arith.constant 0 : i32
    return %c0_i32, %c0_i32_0, %c0_i32_1 : i32, i32, i32
  }
  func.func @transform_3(%arg0: i32) -> (i32, i32) {
    %c0_i32 = arith.constant 0 : i32
    %c0_i32_0 = arith.constant 0 : i32
    return %arg0, %c0_i32 : i32, i32
  }
}

</mosaic_0001>

<bundles_post_ra>
// kernel: capacity_model_forward.1
= control target key start
LH: loop header
LB: loop body
LE: loop exit
PB: predicated region body
PF: predicated region fallthrough
CT: control target
= control target key end

     0   :  { %8 = vsyncpa [#allocation3], 0  ;;  %s926_s12 = smov [#allocation2]   ;;  %s1078_s0 = inlined_call_operand.vmem [shape: bf16[128,128], index: 0, kind: input, shape index: {}]   ;;  %s1079_s1 = inlined_call_operand.hbm [shape: bf16[3,128,128], index: 1, kind: input, shape index: {}]   ;;  %s1080_s2 = inlined_call_operand.vmem [shape: f32[3,1,128], index: 2, kind: input, shape index: {}]   ;;  %s1081_s3 = inlined_call_operand.vmem [shape: f32[128,128], index: 3, kind: output, shape index: {}]  }
   0x1   :  { %s16_s13 = sshll.u32 %s926_s12, 4  ;;  %s902_s16 = scalar_lea.hbm %s1079_s1, 3072  ;;  %s17_s13 = int_to_ptr.vmem [resolvable:$true] %s16_s13 }
   0x2   :  { %p903_p0 = scmp.ne.s32.totalorder %s1079_s1, %s902_s16  ;;  %p906_p1 = scmp.lt.u32.totalorder %s902_s16, %s1079_s1 }
   0x4   :  { %p908_p2 = pnand %p906_p1, %p903_p0 }
   0x6   :  { %911 = shalt.err (!%p908_p2)
}
   0x7   :  { %s912_s21 = scalar_lea.vmem %s17_s13, 3072  ;;  %p917_p4 = scmp.lt.s32.totalorder %s17_s13, %s17_s13 }
   0x8   :  { %p913_p3 = scmp.ne.s32.totalorder %s17_s13, %s912_s21  ;;  %p918_p5 = scmp.lt.s32.totalorder %s912_s21, %s912_s21 }
   0xa   :  { %p919_p6 = por %p918_p5, %p917_p4 }
   0xc   :  { %p920_p7 = pnand %p919_p6, %p913_p3 }
   0xe   :  { %923 = shalt.err (!%p920_p7)
}
   0xf   :  { %s927_s22 = smov 64   ;;  %s928_s23 = smov 4  }
  0x10   :  { %22 = dma.hbm_to_vmem [thread:$0]  %s1079_s1, 3072, %s17_s13, [#allocation3], %s927_s22, %s927_s22, %s928_s23  }
  0x11   :  { %924 = dma.done.wait [#allocation3], 3072  }
  0x12   :  { %925 = vsyncadd [#allocation3], 4294964224  ;;  %v870_v0 = vld [vmem:[#allocation2] sm:$0xff]   ;;  %v871_v1 = vld [vmem:[#allocation2 + $0x8] sm:$0xff]  }
  0x13   :  { %755 = vmatprep.subr.bf16.mxu0 %v870_v0  ;;  %v872_v2 = vld [vmem:[#allocation2 + $0x10] sm:$0xff]   ;;  %v873_v3 = vld [vmem:[#allocation2 + $0x18] sm:$0xff]   ;;  %v878_v4 = vld [vmem:[%s1078_s0] sm:$0xff]  }
  0x14   :  { %756 = vmatpush3.bf16.msra.mxu0 %v870_v0  ;;  %771 = vmatprep.mubr.bf16.mxu0 %v878_v4  ;;  %v874_v5 = vld [vmem:[#allocation2 + $0x20] sm:$0xff]   ;;  %v875_v6 = vld [vmem:[#allocation2 + $0x28] sm:$0xff]   ;;  %v876_v9 = vld [vmem:[#allocation2 + $0x30] sm:$0xff]  }
  0x15   :  { %757 = vmatprep.subr.bf16.mxu0 %v871_v1  ;;  %v886_v7 = vld [vmem:[#allocation2 + $0x40] sm:$0xff]   ;;  %v887_v8 = vld [vmem:[#allocation2 + $0x48] sm:$0xff]   ;;  %v888_v10 = vld [vmem:[#allocation2 + $0x50] sm:$0xff]  }
  0x16   :  { %787 = vmatprep.subr.bf16.mxu1 %v886_v7  ;;  %v877_v11 = vld [vmem:[#allocation2 + $0x38] sm:$0xff]   ;;  %v890_v13 = vld [vmem:[#allocation2 + $0x60] sm:$0xff]   ;;  %v879_v14 = vld [vmem:[%s1078_s0 + $0x8] sm:$0xff]  }
  0x17   :  { %788 = vmatpush3.bf16.msra.mxu1 %v886_v7  ;;  %v889_v12 = vld [vmem:[#allocation2 + $0x58] sm:$0xff]   ;;  %v880_v15 = vld [vmem:[%s1078_s0 + $0x10] sm:$0xff]   ;;  %v891_v16 = vld [vmem:[#allocation2 + $0x68] sm:$0xff]  }
  0x18   :  { %758 = vmatpush3.bf16.msra.mxu0 %v871_v1  ;;  %789 = vmatprep.subr.bf16.mxu1 %v887_v8  ;;  %v881_v17 = vld [vmem:[%s1078_s0 + $0x18] sm:$0xff]   ;;  %v882_v18 = vld [vmem:[%s1078_s0 + $0x20] sm:$0xff]   ;;  %v883_v19 = vld [vmem:[%s1078_s0 + $0x28] sm:$0xff]  }
  0x19   :  { %759 = vmatprep.subr.bf16.mxu0 %v872_v2  ;;  %v884_v20 = vld [vmem:[%s1078_s0 + $0x30] sm:$0xff]   ;;  %v885_v21 = vld [vmem:[%s1078_s0 + $0x38] sm:$0xff]   ;;  %v894_v24 = vld [vmem:[#allocation2 + $0x80] sm:$0xff]  }
  0x1a   :  { %v892_v22 = vld [vmem:[#allocation2 + $0x70] sm:$0xff]   ;;  %v893_v23 = vld [vmem:[#allocation2 + $0x78] sm:$0xff]   ;;  %v895_v25 = vld [vmem:[#allocation2 + $0x88] sm:$0xff]  }
  0x1b   :  { %790 = vmatpush3.bf16.msra.mxu1 %v887_v8  ;;  %v896_v26 = vld [vmem:[#allocation2 + $0x90] sm:$0xff]   ;;  %v985_v27 = vld [vmem:[#allocation2 + $0x98] sm:$0xff]   ;;  %v988_v28 = vld [vmem:[#allocation2 + $0xa0] sm:$0xff]  }
  0x1c   :  { %760 = vmatpush3.bf16.msra.mxu0 %v872_v2  ;;  %791 = vmatprep.subr.bf16.mxu1 %v888_v10  ;;  %v992_v29 = vld [vmem:[#allocation2 + $0xa8] sm:$0xff]   ;;  %v1000_v30 = vld [vmem:[%s1080_s2] ss:$0 sm:$0xff] }
  0x1d   :  { %761 = vmatprep.subr.bf16.mxu0 %v873_v3 }
  0x1f   :  { %792 = vmatpush3.bf16.msra.mxu1 %v888_v10 }
  0x20   :  { %762 = vmatpush3.bf16.msra.mxu0 %v873_v3  ;;  %793 = vmatprep.subr.bf16.mxu1 %v889_v12 }
  0x21   :  { %763 = vmatprep.subr.bf16.mxu0 %v874_v5 }
  0x23   :  { %794 = vmatpush3.bf16.msra.mxu1 %v889_v12 }
  0x24   :  { %764 = vmatpush3.bf16.msra.mxu0 %v874_v5  ;;  %795 = vmatprep.subr.bf16.mxu1 %v890_v13 }
  0x25   :  { %765 = vmatprep.subr.bf16.mxu0 %v875_v6 }
  0x27   :  { %796 = vmatpush3.bf16.msra.mxu1 %v890_v13 }
  0x28   :  { %766 = vmatpush3.bf16.msra.mxu0 %v875_v6  ;;  %797 = vmatprep.subr.bf16.mxu1 %v891_v16 }
  0x29   :  { %767 = vmatprep.subr.bf16.mxu0 %v876_v9 }
  0x2b   :  { %798 = vmatpush3.bf16.msra.mxu1 %v891_v16 }
  0x2c   :  { %768 = vmatpush3.bf16.msra.mxu0 %v876_v9  ;;  %799 = vmatprep.subr.bf16.mxu1 %v892_v22 }
  0x2d   :  { %769 = vmatprep.subr.bf16.mxu0 %v877_v11 }
  0x2f   :  { %800 = vmatpush3.bf16.msra.mxu1 %v892_v22 }
  0x30   :  { %770 = vmatpush3.bf16.msra.mxu0 %v877_v11  ;;  %801 = vmatprep.subr.bf16.mxu1 %v893_v23 }
  0x31   :  { %819 = vmatprep.subr.bf16.mxu0 %v894_v24 }
  0x33   :  { %772 = vmatmul.mubr.bf16.vlgmr.msra.gmra.mrb[0].mxu0 %v879_v14  ;;  %802 = vmatpush3.bf16.msra.mxu1 %v893_v23  ;;  %v900_v23 = vld [vmem:[#allocation2 + $0xb0] sm:$0xff]  }
  0x34   :  { %775 = vmatprep.mubr.bf16.mxu0 %v880_v15  ;;  %851 = vmatprep.subr.bf16.mxu1 %v894_v24 }
  0x35   :  { %820 = vmatpush3.bf16.msra.mxu0 %v894_v24 }
  0x36   :  { %821 = vmatprep.subr.bf16.mxu0 %v895_v25 }
  0x39   :  { %822 = vmatpush3.bf16.msra.mxu0 %v895_v25 }
  0x3a   :  { %823 = vmatprep.subr.bf16.mxu0 %v896_v26 }
  0x3b   :  { %776 = vmatmul.mubr.bf16.gmra.mrb[4].mxu0 %v881_v17 }
  0x3c   :  { %779 = vmatprep.mubr.bf16.mxu0 %v882_v18 }
  0x3d   :  { %824 = vmatpush3.bf16.msra.mxu0 %v896_v26 }
  0x3e   :  { %825 = vmatprep.subr.bf16.mxu0 %v985_v27 }
  0x41   :  { %826 = vmatpush3.bf16.msra.mxu0 %v985_v27 }
  0x42   :  { %827 = vmatprep.subr.bf16.mxu0 %v988_v28 }
  0x43   :  { %780 = vmatmul.mubr.bf16.gmra.mrb[8].mxu0 %v883_v19 }
  0x44   :  { %783 = vmatprep.mubr.bf16.mxu0 %v884_v20 }
  0x45   :  { %828 = vmatpush3.bf16.msra.mxu0 %v988_v28 }
  0x46   :  { %829 = vmatprep.subr.bf16.mxu0 %v992_v29 }
  0x49   :  { %830 = vmatpush3.bf16.msra.mxu0 %v992_v29 }
  0x4a   :  { %831 = vmatprep.subr.bf16.mxu0 %v900_v23 }
  0x4b   :  { %784 = vmatmul.mubr.bf16.gmra.mrb[12].mxu0 %v885_v21 }
  0x4d   :  { %832 = vmatpush3.bf16.msra.mxu0 %v900_v23 }
 0x106   :  { %v773_v31 = vpop.f32.mrb[0].mxu0 }
 0x107   :  { %v207_v32 = vadd.f32 %v773_v31, %v1000_v30  ;;  %v198_v33 = vpop.f32.mrb[1].mxu0 }
 0x108   :  { %v199_v34 = vadd.f32 %v1000_v30, %v198_v33  ;;  %v774_v35 = vpop.f32.mrb[2].mxu0 }
 0x109   :  { %v210_v36 = vadd.f32 %v774_v35, %v1000_v30  ;;  %v201_v37 = vpop.f32.mrb[3].mxu0  ;;  %v263_v39 = vmax.f32 %v207_v32, 0.0 }
 0x10a   :  { %v202_v38 = vadd.f32 %v1000_v30, %v201_v37  ;;  %v261_v41 = vmax.f32 %v199_v34, 0.0 }
 0x10b   :  { %v264_v40 = vmax.f32 %v210_v36, 0.0 }
 0x10c   :  { %v262_v42 = vmax.f32 %v202_v38, 0.0 }
 0x10d   :  { %v278_v43 = vpack.c.bf16 %v264_v40, %v263_v39 }
 0x10e   :  { %v777_v44 = vpop.f32.mrb[4].mxu0  ;;  %v277_v45 = vpack.c.bf16 %v262_v42, %v261_v41 }
 0x10f   :  { %v223_v46 = vadd.f32 %v777_v44, %v1000_v30  ;;  %v214_v47 = vpop.f32.mrb[5].mxu0 }
 0x110   :  { %v215_v48 = vadd.f32 %v1000_v30, %v214_v47  ;;  %v778_v49 = vpop.f32.mrb[6].mxu0  ;;  %803 = vmatprep.mubr.bf16.mxu1 %v277_v45 }
 0x111   :  { %v226_v50 = vadd.f32 %v778_v49, %v1000_v30  ;;  %v217_v51 = vpop.f32.mrb[7].mxu0  ;;  %804 = vmatmul.mubr.bf16.vlgmr.msra.gmra.mrb[0].mxu1 %v278_v43  ;;  %v267_v53 = vmax.f32 %v223_v46, 0.0 }
 0x112   :  { %v218_v52 = vadd.f32 %v1000_v30, %v217_v51  ;;  %859 = vmatpush3.bf16.msra.mxu1 %v894_v24  ;;  %v265_v55 = vmax.f32 %v215_v48, 0.0  ;;  %v901_v24 = vld [vmem:[#allocation2 + $0xb8] sm:$0xff]  }
 0x113   :  { %v268_v54 = vmax.f32 %v226_v50, 0.0  ;;  %852 = vmatprep.subr.bf16.mxu1 %v895_v25  ;;  %833 = vmatprep.subr.bf16.mxu0 %v901_v24 }
 0x114   :  { %v266_v56 = vmax.f32 %v218_v52, 0.0  ;;  %834 = vmatpush3.bf16.msra.mxu0 %v901_v24 }
 0x115   :  { %v280_v57 = vpack.c.bf16 %v268_v54, %v267_v53 }
 0x116   :  { %v279_v58 = vpack.c.bf16 %v266_v56, %v265_v55  ;;  %v781_v59 = vpop.f32.mrb[8].mxu0  ;;  %860 = vmatpush3.bf16.msra.mxu1 %v895_v25  ;;  %v688_v25 = vld [vmem:[%s1080_s2 + $0x1] ss:$0 sm:$0xff] }
 0x117   :  { %v239_v60 = vadd.f32 %v781_v59, %v1000_v30  ;;  %v230_v61 = vpop.f32.mrb[9].mxu0  ;;  %853 = vmatprep.subr.bf16.mxu1 %v896_v26 }
 0x118   :  { %v231_v62 = vadd.f32 %v1000_v30, %v230_v61  ;;  %v782_v63 = vpop.f32.mrb[10].mxu0  ;;  %807 = vmatprep.mubr.bf16.mxu1 %v279_v58 }
 0x119   :  { %v242_v0 = vadd.f32 %v782_v63, %v1000_v30  ;;  %v233_v1 = vpop.f32.mrb[11].mxu0  ;;  %808 = vmatmul.mubr.bf16.gmra.mrb[4].mxu1 %v280_v57  ;;  %v271_v3 = vmax.f32 %v239_v60, 0.0 }
 0x11a   :  { %v234_v2 = vadd.f32 %v1000_v30, %v233_v1  ;;  %861 = vmatpush3.bf16.msra.mxu1 %v896_v26  ;;  %v269_v5 = vmax.f32 %v231_v62, 0.0 }
 0x11b   :  { %v272_v4 = vmax.f32 %v242_v0, 0.0  ;;  %854 = vmatprep.subr.bf16.mxu1 %v985_v27 }
 0x11c   :  { %v270_v6 = vmax.f32 %v234_v2, 0.0 }
 0x11d   :  { %v282_v7 = vpack.c.bf16 %v272_v4, %v271_v3 }
 0x11e   :  { %v281_v8 = vpack.c.bf16 %v270_v6, %v269_v5  ;;  %v785_v9 = vpop.f32.mrb[12].mxu0  ;;  %862 = vmatpush3.bf16.msra.mxu1 %v985_v27 }
 0x11f   :  { %v255_v10 = vadd.f32 %v785_v9, %v1000_v30  ;;  %v246_v11 = vpop.f32.mrb[13].mxu0  ;;  %855 = vmatprep.subr.bf16.mxu1 %v988_v28 }
 0x120   :  { %v247_v12 = vadd.f32 %v1000_v30, %v246_v11  ;;  %v786_v13 = vpop.f32.mrb[14].mxu0  ;;  %811 = vmatprep.mubr.bf16.mxu1 %v281_v8 }
 0x121   :  { %v258_v14 = vadd.f32 %v786_v13, %v1000_v30  ;;  %v249_v15 = vpop.f32.mrb[15].mxu0  ;;  %812 = vmatmul.mubr.bf16.gmra.mrb[8].mxu1 %v282_v7  ;;  %v275_v17 = vmax.f32 %v255_v10, 0.0 }
 0x122   :  { %v250_v16 = vadd.f32 %v1000_v30, %v249_v15  ;;  %863 = vmatpush3.bf16.msra.mxu1 %v988_v28  ;;  %v273_v19 = vmax.f32 %v247_v12, 0.0 }
 0x123   :  { %v276_v18 = vmax.f32 %v258_v14, 0.0  ;;  %856 = vmatprep.subr.bf16.mxu1 %v992_v29 }
 0x124   :  { %v274_v20 = vmax.f32 %v250_v16, 0.0 }
 0x125   :  { %v284_v21 = vpack.c.bf16 %v276_v18, %v275_v17  ;;  %v698_v18 = vld [vmem:[%s1080_s2 + $0x2] ss:$0 sm:$0xff] }
 0x126   :  { %v283_v22 = vpack.c.bf16 %v274_v20, %v273_v19  ;;  %864 = vmatpush3.bf16.msra.mxu1 %v992_v29 }
 0x127   :  { %857 = vmatprep.subr.bf16.mxu1 %v900_v23 }
 0x128   :  { %815 = vmatprep.mubr.bf16.mxu1 %v283_v22 }
 0x129   :  { %816 = vmatmul.mubr.bf16.gmra.mrb[12].mxu1 %v284_v21 }
 0x12a   :  { %865 = vmatpush3.bf16.msra.mxu1 %v900_v23 }
 0x12b   :  { %858 = vmatprep.subr.bf16.mxu1 %v901_v24 }
 0x12e   :  { %866 = vmatpush3.bf16.msra.mxu1 %v901_v24 }
 0x1e4   :  { %v805_v26 = vpop.f32.mrb[0].mxu1 }
 0x1e5   :  { %v401_v27 = vadd.f32 %v805_v26, %v688_v25  ;;  %v392_v28 = vpop.f32.mrb[1].mxu1 }
 0x1e6   :  { %v393_v29 = vadd.f32 %v688_v25, %v392_v28  ;;  %v806_v30 = vpop.f32.mrb[2].mxu1 }
 0x1e7   :  { %v404_v31 = vadd.f32 %v806_v30, %v688_v25  ;;  %v395_v32 = vpop.f32.mrb[3].mxu1  ;;  %v457_v34 = vmax.f32 %v401_v27, 0.0 }
 0x1e8   :  { %v396_v33 = vadd.f32 %v688_v25, %v395_v32  ;;  %v455_v36 = vmax.f32 %v393_v29, 0.0 }
 0x1e9   :  { %v458_v35 = vmax.f32 %v404_v31, 0.0 }
 0x1ea   :  { %v456_v37 = vmax.f32 %v396_v33, 0.0 }
 0x1eb   :  { %v472_v38 = vpack.c.bf16 %v458_v35, %v457_v34 }
 0x1ec   :  { %v471_v39 = vpack.c.bf16 %v456_v37, %v455_v36  ;;  %v809_v40 = vpop.f32.mrb[4].mxu1 }
 0x1ed   :  { %v417_v41 = vadd.f32 %v809_v40, %v688_v25  ;;  %v408_v42 = vpop.f32.mrb[5].mxu1 }
 0x1ee   :  { %v409_v43 = vadd.f32 %v688_v25, %v408_v42  ;;  %v810_v44 = vpop.f32.mrb[6].mxu1  ;;  %835 = vmatprep.mubr.bf16.mxu0 %v471_v39 }
 0x1ef   :  { %v420_v45 = vadd.f32 %v810_v44, %v688_v25  ;;  %v411_v46 = vpop.f32.mrb[7].mxu1  ;;  %836 = vmatmul.mubr.bf16.vlgmr.msra.gmra.mrb[16].mxu0 %v472_v38  ;;  %v461_v48 = vmax.f32 %v417_v41, 0.0 }
 0x1f0   :  { %v412_v47 = vadd.f32 %v688_v25, %v411_v46  ;;  %v459_v50 = vmax.f32 %v409_v43, 0.0 }
 0x1f1   :  { %v462_v49 = vmax.f32 %v420_v45, 0.0 }
 0x1f2   :  { %v460_v51 = vmax.f32 %v412_v47, 0.0 }
 0x1f3   :  { %v474_v52 = vpack.c.bf16 %v462_v49, %v461_v48 }
 0x1f4   :  { %v473_v53 = vpack.c.bf16 %v460_v51, %v459_v50  ;;  %v813_v54 = vpop.f32.mrb[8].mxu1 }
 0x1f5   :  { %v433_v55 = vadd.f32 %v813_v54, %v688_v25  ;;  %v424_v56 = vpop.f32.mrb[9].mxu1 }
 0x1f6   :  { %v425_v57 = vadd.f32 %v688_v25, %v424_v56  ;;  %v814_v58 = vpop.f32.mrb[10].mxu1  ;;  %839 = vmatprep.mubr.bf16.mxu0 %v473_v53 }
 0x1f7   :  { %v436_v59 = vadd.f32 %v814_v58, %v688_v25  ;;  %v427_v60 = vpop.f32.mrb[11].mxu1  ;;  %840 = vmatmul.mubr.bf16.gmra.mrb[20].mxu0 %v474_v52  ;;  %v465_v62 = vmax.f32 %v433_v55, 0.0 }
 0x1f8   :  { %v428_v61 = vadd.f32 %v688_v25, %v427_v60  ;;  %v463_v0 = vmax.f32 %v425_v57, 0.0 }
 0x1f9   :  { %v466_v63 = vmax.f32 %v436_v59, 0.0 }
 0x1fa   :  { %v464_v1 = vmax.f32 %v428_v61, 0.0 }
 0x1fb   :  { %v476_v2 = vpack.c.bf16 %v466_v63, %v465_v62 }
 0x1fc   :  { %v475_v3 = vpack.c.bf16 %v464_v1, %v463_v0  ;;  %v817_v4 = vpop.f32.mrb[12].mxu1 }
 0x1fd   :  { %v449_v5 = vadd.f32 %v817_v4, %v688_v25  ;;  %v440_v6 = vpop.f32.mrb[13].mxu1 }
 0x1fe   :  { %v441_v7 = vadd.f32 %v688_v25, %v440_v6  ;;  %v818_v8 = vpop.f32.mrb[14].mxu1  ;;  %843 = vmatprep.mubr.bf16.mxu1 %v475_v3 }
 0x1ff   :  { %v452_v9 = vadd.f32 %v818_v8, %v688_v25  ;;  %v443_v10 = vpop.f32.mrb[15].mxu1  ;;  %844 = vmatmul.mubr.bf16.vlgmr.msra.gmra.mrb[16].mxu1 %v476_v2  ;;  %v469_v12 = vmax.f32 %v449_v5, 0.0 }
 0x200   :  { %v444_v11 = vadd.f32 %v688_v25, %v443_v10  ;;  %v467_v14 = vmax.f32 %v441_v7, 0.0 }
 0x201   :  { %v470_v13 = vmax.f32 %v452_v9, 0.0 }
 0x202   :  { %v468_v15 = vmax.f32 %v444_v11, 0.0 }
 0x203   :  { %v478_v16 = vpack.c.bf16 %v470_v13, %v469_v12 }
 0x204   :  { %v477_v17 = vpack.c.bf16 %v468_v15, %v467_v14 }
 0x206   :  { %847 = vmatprep.mubr.bf16.mxu1 %v477_v17 }
 0x207   :  { %848 = vmatmul.mubr.bf16.gmra.mrb[20].mxu1 %v478_v16 }
 0x2c2   :  { %v837_v19 = vpop.f32.mrb[16].mxu0 }
 0x2c3   :  { %v595_v20 = vadd.f32 %v837_v19, %v698_v18  ;;  %v586_v21 = vpop.f32.mrb[17].mxu0 }
 0x2c4   :  { %v587_v22 = vadd.f32 %v698_v18, %v586_v21  ;;  %v838_v23 = vpop.f32.mrb[18].mxu0 }
 0x2c5   :  { %651 = vst [vmem:[%s1081_s3 + $0x10] sm:$0xff] %v595_v20  ;;  %v598_v24 = vadd.f32 %v838_v23, %v698_v18  ;;  %v589_v25 = vpop.f32.mrb[19].mxu0 }
 0x2c6   :  { %649 = vst [vmem:[%s1081_s3] sm:$0xff] %v587_v22  ;;  %v590_v26 = vadd.f32 %v698_v18, %v589_v25 }
 0x2c7   :  { %652 = vst [vmem:[%s1081_s3 + $0x18] sm:$0xff] %v598_v24 }
 0x2c8   :  { %650 = vst [vmem:[%s1081_s3 + $0x8] sm:$0xff] %v590_v26 }
 0x2ca   :  { %v841_v27 = vpop.f32.mrb[20].mxu0 }
 0x2cb   :  { %v611_v28 = vadd.f32 %v841_v27, %v698_v18  ;;  %v602_v29 = vpop.f32.mrb[21].mxu0 }
 0x2cc   :  { %v603_v30 = vadd.f32 %v698_v18, %v602_v29  ;;  %v842_v31 = vpop.f32.mrb[22].mxu0 }
 0x2cd   :  { %655 = vst [vmem:[%s1081_s3 + $0x30] sm:$0xff] %v611_v28  ;;  %v614_v32 = vadd.f32 %v842_v31, %v698_v18  ;;  %v605_v33 = vpop.f32.mrb[23].mxu0 }
 0x2ce   :  { %653 = vst [vmem:[%s1081_s3 + $0x20] sm:$0xff] %v603_v30  ;;  %v606_v34 = vadd.f32 %v698_v18, %v605_v33 }
 0x2cf   :  { %656 = vst [vmem:[%s1081_s3 + $0x38] sm:$0xff] %v614_v32 }
 0x2d0   :  { %654 = vst [vmem:[%s1081_s3 + $0x28] sm:$0xff] %v606_v34 }
 0x2d2   :  { %v845_v35 = vpop.f32.mrb[16].mxu1 }
 0x2d3   :  { %v627_v36 = vadd.f32 %v845_v35, %v698_v18  ;;  %v618_v37 = vpop.f32.mrb[17].mxu1 }
 0x2d4   :  { %v619_v38 = vadd.f32 %v698_v18, %v618_v37  ;;  %v846_v39 = vpop.f32.mrb[18].mxu1 }
 0x2d5   :  { %659 = vst [vmem:[%s1081_s3 + $0x50] sm:$0xff] %v627_v36  ;;  %v630_v40 = vadd.f32 %v846_v39, %v698_v18  ;;  %v621_v41 = vpop.f32.mrb[19].mxu1 }
 0x2d6   :  { %657 = vst [vmem:[%s1081_s3 + $0x40] sm:$0xff] %v619_v38  ;;  %v622_v42 = vadd.f32 %v698_v18, %v621_v41 }
 0x2d7   :  { %660 = vst [vmem:[%s1081_s3 + $0x58] sm:$0xff] %v630_v40 }
 0x2d8   :  { %658 = vst [vmem:[%s1081_s3 + $0x48] sm:$0xff] %v622_v42 }
 0x2da   :  { %v849_v43 = vpop.f32.mrb[20].mxu1 }
 0x2db   :  { %v643_v44 = vadd.f32 %v849_v43, %v698_v18  ;;  %v634_v45 = vpop.f32.mrb[21].mxu1 }
 0x2dc   :  { %v635_v46 = vadd.f32 %v698_v18, %v634_v45  ;;  %v850_v47 = vpop.f32.mrb[22].mxu1 }
 0x2dd   :  { %663 = vst [vmem:[%s1081_s3 + $0x70] sm:$0xff] %v643_v44  ;;  %v646_v48 = vadd.f32 %v850_v47, %v698_v18  ;;  %v637_v49 = vpop.f32.mrb[23].mxu1 }
 0x2de   :  { %661 = vst [vmem:[%s1081_s3 + $0x60] sm:$0xff] %v635_v46  ;;  %v638_v50 = vadd.f32 %v698_v18, %v637_v49 }
 0x2df   :  { %664 = vst [vmem:[%s1081_s3 + $0x78] sm:$0xff] %v646_v48 }
 0x2e0   :  { %662 = vst [vmem:[%s1081_s3 + $0x68] sm:$0xff] %v638_v50 }
 0x2e1   :  { %669 = vsyncpa [#allocation3], 1 }

</bundles_post_ra>
